<compile_context>
chip_gen: v7x
topology: tpu7x:2x2x1
jax: 0.10.0
libtpu: 0.0.40
codegen_flags: <defaults>
</compile_context>

<pallas_src>
import functools

import jax
import jax.numpy as jnp
from jax.experimental import pallas as pl
from jax.experimental.pallas import tpu as pltpu


def _round_up(x, m):
    return ((x + m - 1) // m) * m


def build_layer_dims(depth, shape_in, dim_out, reduction_step, reduction_ratio):
    """Replicates GreedyResNet.__init__ layer-dimension schedule."""
    d_in = 1
    for s in shape_in:
        d_in *= s                      # dim(shape_in)
    mod_dim_out = d_in
    dims = []
    for i in range(depth):
        if (i + 1) % reduction_step == 0:
            mod_dim_out = int(mod_dim_out * reduction_ratio)
        if mod_dim_out < dim_out or i == depth - 1:
            mod_dim_out = dim_out
        dims.append(mod_dim_out)
    return dims


# --------------------------------------------------------------------------
# Fused kernel: the whole residual chain collapses to a (possibly masked) copy.
# --------------------------------------------------------------------------
def _greedy_resnet_kernel(x_ref, o_ref, *, mask_width):
    # ZeroModule-only ConvexSums => each layer is x = 0 + x[:, :d_out]; the
    # composed truncations reduce to a single min-width mask.  Since every
    # d_out >= final dim_out under build_layer_dims and the wrapper slices
    # [:, :dim_out] afterwards, mask_width is None and this is a pure tile copy.
    x = x_ref[...]
    if mask_width is not None:
        col = jax.lax.broadcasted_iota(jnp.int32, x.shape, 1)
        x = jnp.where(col < mask_width, x, jnp.zeros_like(x))
    o_ref[...] = x


def greedy_resnet_forward(x, layer_dims, layer_cws=None):
    del layer_cws  # multiplies the zero (ZeroModule) branch; numerically inert.

    N = x.shape[0]
    x_flat = x.reshape(N, -1).astype(jnp.float32)    # == torch .view(N, -1)
    D = x_flat.shape[1]
    dim_out = int(layer_dims[-1])
    min_dim = int(min(layer_dims))

    # Lane-dense working width: only the first ceil(dim_out/128)*128 lanes are
    # ever needed (kept >=128-aligned so stores stay unmasked).  No column pad:
    # a 128-multiple block on the unpadded input is legal.
    W = min(D, _round_up(dim_out, 128))

    # Only keep a (single) mask if an intermediate layer truncates below the
    # final dim_out; never happens under build_layer_dims' clamping.
    mask_width = None if min_dim >= min(dim_out, W) else min_dim

    # Row tiling: one full block at small N; multiple-of-8 row tiles with
    # "parallel" semantics if batch ever scales (megacore split on v7x, large
    # tiles to amortize the ~0.35us/step overhead on v6e/v5e).
    if N <= 512:
        tile_m, grid_m = N, 1
    else:
        tile_m = 512
        grid_m = pl.cdiv(N, tile_m)

    out = pl.pallas_call(
        functools.partial(_greedy_resnet_kernel, mask_width=mask_width),
        out_shape=jax.ShapeDtypeStruct((N, W), jnp.float32),
        grid=(grid_m,),
        in_specs=[pl.BlockSpec((tile_m, W), lambda i: (i, 0))],
        out_specs=pl.BlockSpec((tile_m, W), lambda i: (i, 0)),
        compiler_params=pltpu.CompilerParams(
            dimension_semantics=("parallel",)),
    )(x_flat)

    # Lanes dim_out..W-1 of the slab carry raw input values (no mask needed);
    # they are dropped here and must never be consumed directly.
    return out[:N, :dim_out]


if __name__ == "__main__":
    # Small shapes consistent with the module: shape_in = (4, 16, 16) -> 1024
    # features, batch = 2, depth = 4, dim_out = 10, halve features every 2 layers.
    batch, c, h, w = 2, 4, 16, 16
    depth, dim_out = 4, 10
    reduction_step, reduction_ratio = 2, 0.5

    layer_dims = build_layer_dims(depth, (c, h, w), dim_out,
                                  reduction_step, reduction_ratio)
    # Freshly-constructed module: each ConvexSum holds one ZeroModule, weight 1.0.
    layer_cws = [1.0] * depth
    # TODO(synk): ConvexSum.append / find_away_direction / reduce_weight and
    # GreedyResNet.update (Frank-Wolfe training bookkeeping over arbitrary
    # trained submodules) are host-side control flow with no Pallas equivalent;
    # only the as-constructed forward (ZeroModule members) is implemented.

    key = jax.random.PRNGKey(0)
    x = jax.random.normal(key, (batch, c, h, w), jnp.float32)

    out = jax.block_until_ready(greedy_resnet_forward(x, layer_dims, layer_cws))

    # Reference: with ZeroModule-only ConvexSums, each layer is 0 + x[:, :d_out],
    # so the forward equals flatten(x)[:, :dim_out].
    ref = x.reshape(batch, -1)[:, :dim_out]
    assert out.shape == (batch, dim_out), out.shape
    assert bool(jnp.all(jnp.isfinite(out)))
    assert bool(jnp.allclose(out, ref, atol=1e-6, rtol=1e-6))
    print("KERNEL_OK")
</pallas_src>

<mosaic_0001>
module attributes {stable_mosaic.version = 11 : i64} {
  func.func @_greedy_resnet_kernel(%arg0: i32, %arg1: memref<2x128xf32, #tpu.memory_space<vmem>>, %arg2: memref<2x128xf32, #tpu.memory_space<vmem>>) attributes {dimension_semantics = [#tpu.dimension_semantics<parallel>], iteration_bounds = array<i64: 1>, scalar_prefetch = 0 : i64, scratch_operands = 0 : i64, tpu.core_type = #tpu.core_type<tc>, window_params = [{transform_indices = @transform_0, window_bounds = array<i64: 2, 128>}, {transform_indices = @transform_1, window_bounds = array<i64: 2, 128>}]} {
    %c0 = arith.constant 0 : index
    %c0_0 = arith.constant 0 : index
    %0 = vector.load %arg1[%c0, %c0_0] : memref<2x128xf32, #tpu.memory_space<vmem>>, vector<2x128xf32>
    %c0_1 = arith.constant 0 : index
    %c0_2 = arith.constant 0 : index
    %1 = vector.load %arg2[%c0_1, %c0_2] : memref<2x128xf32, #tpu.memory_space<vmem>>, vector<2x128xf32>
    tpu.vector_store %arg2[%c0_1, %c0_2], %0 {strides = array<i32>} : memref<2x128xf32, #tpu.memory_space<vmem>>, vector<2x128xf32>,
    return
  }
  func.func @transform_0(%arg0: i32) -> (i32, i32) {
    %c0_i32 = arith.constant 0 : i32
    %c0_i32_0 = arith.constant 0 : i32
    return %arg0, %c0_i32 : i32, i32
  }
  func.func @transform_1(%arg0: i32) -> (i32, i32) {
    %c0_i32 = arith.constant 0 : i32
    %c0_i32_0 = arith.constant 0 : i32
    return %arg0, %c0_i32 : i32, i32
  }
}

</mosaic_0001>

<bundles_post_ra>
// kernel: tpu_custom_call.1
= control target key start
LH: loop header
LB: loop body
LE: loop exit
PB: predicated region body
PF: predicated region fallthrough
CT: control target
= control target key end

     0   :  { %6 = vsyncpa [#allocation3], 0  ;;  %s127_s0 = inlined_call_operand.hbm [shape: f32[2,1024], index: 0, kind: input, shape index: {}]   ;;  %s128_s1 = inlined_call_operand.hbm [shape: f32[2,128], index: 1, kind: output, shape index: {}]  }
   0x1   :  { %7 = vsyncpa [#allocation4], 0  ;;  %s88_s6 = smov [#allocation2]   ;;  %s40_s10 = scalar_lea.hbm %s127_s0, 32 }
   0x2   :  { %s14_s7 = sshll.u32 %s88_s6, 4  ;;  %p41_p0 = scmp.ne.s32.totalorder %s127_s0, %s40_s10  ;;  %s15_s7 = int_to_ptr.vmem [resolvable:$true] %s14_s7 }
   0x3   :  { %s42_s15 = scalar_lea.hbm %s127_s0, 256  ;;  %p44_p2 = scmp.lt.u32.totalorder %s40_s10, %s127_s0 }
   0x4   :  { %p43_p1 = scmp.lt.u32.totalorder %s42_s15, %s40_s10 }
   0x6   :  { %p45_p3 = por %p44_p2, %p43_p1 }
   0x8   :  { %p46_p4 = pnand %p45_p3, %p41_p0 }
   0xa   :  { %49 = shalt.err (!%p46_p4)
}
   0xb   :  { %s50_s18 = scalar_lea.vmem %s15_s7, 32  ;;  %p55_p6 = scmp.lt.s32.totalorder %s15_s7, %s15_s7 }
   0xc   :  { %p51_p5 = scmp.ne.s32.totalorder %s15_s7, %s50_s18  ;;  %p56_p7 = scmp.lt.s32.totalorder %s50_s18, %s50_s18 }
   0xe   :  { %p57_p8 = por %p56_p7, %p55_p6 }
  0x10   :  { %p58_p9 = pnand %p57_p8, %p51_p5 }
  0x12   :  { %61 = shalt.err (!%p58_p9)
}
  0x13   :  { %17 = dma.hbm_to_vmem [thread:$0]  %s127_s0, 32, %s15_s7, [#allocation3]  }
  0x14   :  { %84 = dma.done.wait [#allocation3], 32  }
  0x15   :  { %85 = vsyncadd [#allocation3], 4294967264  ;;  %s89_s21 = smov [#allocation5]   ;;  %v21_v0 = vld [vmem:[#allocation2] sm:$0x3] }
  0x16   :  { %s29_s22 = sshll.u32 %s89_s21, 4  ;;  %22 = vst [vmem:[#allocation5] sm:$0x3] %v21_v0  ;;  %s30_s22 = int_to_ptr.vmem [resolvable:$true] %s29_s22 }
  0x17   :  { %s62_s23 = scalar_lea.vmem %s30_s22, 32  ;;  %p67_p11 = scmp.lt.s32.totalorder %s30_s22, %s30_s22 }
  0x18   :  { %p63_p10 = scmp.ne.s32.totalorder %s30_s22, %s62_s23  ;;  %p68_p12 = scmp.lt.s32.totalorder %s62_s23, %s62_s23 }
  0x1a   :  { %p69_p13 = por %p68_p12, %p67_p11 }
  0x1c   :  { %p70_p0 = pnand %p69_p13, %p63_p10 }
  0x1e   :  { %73 = shalt.err (!%p70_p0)
}
  0x1f   :  { %s74_s26 = scalar_lea.hbm %s128_s1, 32 }
  0x20   :  { %p75_p1 = scmp.ne.s32.totalorder %s128_s1, %s74_s26  ;;  %p78_p2 = scmp.lt.u32.totalorder %s74_s26, %s128_s1 }
  0x22   :  { %p80_p3 = pnand %p78_p2, %p75_p1 }
  0x24   :  { %83 = shalt.err (!%p80_p3)
}
  0x25   :  { %32 = dma.vmem_to_hbm [thread:$0]  %s30_s22, 32, %s128_s1, [#allocation4]  }
  0x26   :  { %86 = dma.done.wait [#allocation4], 32  }
  0x27   :  { %87 = vsyncadd [#allocation4], 4294967264 }
  0x28   :  { %36 = vsyncpa [#allocation3], 1 }
  0x29   :  { %37 = vsyncpa [#allocation4], 1 }

</bundles_post_ra>
